<compile_context>
chip_gen: v7x
topology: tpu7x:2x2x1
jax: 0.10.0
libtpu: 0.0.40
codegen_flags: <defaults>
</compile_context>

<pallas_src>
import functools

import numpy as np
import jax
import jax.numpy as jnp
from jax import lax
from jax.experimental import pallas as pl
from jax.experimental.pallas import tpu as pltpu


def _ceil_to(x, m):
    return (x + m - 1) // m * m


# ----------------------------------------------------------------------------
# Pallas kernel: one (sample n, Cout-tile co, time-chunk tc) grid step
# ----------------------------------------------------------------------------
def _temporal_conv_bn_kernel(x_ref, w_ref, scale_ref, shift_ref, o_ref, *,
                             k, stride, dilation, t_chunk):
    """VMEM block shapes:

      x_ref:     (1, s, Tg, Vp, Cin)   bf16  phase-major, zero-padded input
      w_ref:     (k*Cin, ct)           bf16  tap-major contraction layout
      scale_ref: (1, ct)               f32   gamma / sqrt(var + eps)
      shift_ref: (1, ct)               f32   beta + (conv_bias - mean) * scale
      o_ref:     (1, t_chunk, Vp, ct)  out dtype (bf16 by default)
    """
    vp = x_ref.shape[3]
    cin = x_ref.shape[4]
    ct = o_ref.shape[3]
    rows = t_chunk * vp

    t0 = pl.multiple_of(pl.program_id(2) * t_chunk, t_chunk)

    # Fold the k taps into the contraction dim: each tap is a contiguous
    # slice of the phase-split input (no im2col materialization in HBM).
    taps = []
    for j in range(k):                        # static, small
        q, r = divmod(j * dilation, stride)   # static ints
        tap = x_ref[0, r, pl.ds(q + t0, t_chunk)]      # (t_chunk, Vp, Cin)
        taps.append(tap.reshape(rows, cin))            # free view (Vp % 16 == 0)
    lhs = taps[0] if k == 1 else jnp.concatenate(taps, axis=-1)  # (rows, k*Cin)

    # One MXU matmul with f32 accumulation + fused conv-bias / BN epilogue.
    y = jnp.dot(lhs, w_ref[...], preferred_element_type=jnp.float32)
    y = y * scale_ref[...] + shift_ref[...]
    o_ref[0] = y.reshape(t_chunk, vp, ct).astype(o_ref.dtype)


# ----------------------------------------------------------------------------
# Wrapper: layout plumbing + pallas_call
# ----------------------------------------------------------------------------
@functools.partial(
    jax.jit,
    static_argnames=("kernel_size", "stride", "dilation", "eps", "out_dtype"))
def temporal_conv_bn(x, weight, bias, gamma, beta, running_mean, running_var,
                     *, kernel_size, stride=1, dilation=1, eps=1e-5,
                     out_dtype=jnp.bfloat16):
    """Forward of TemporalConv (Conv2d((k,1)) + BatchNorm2d, inference BN).

    x:       (N, Cin, T, V)  float32     (PyTorch NCHW layout at the boundary)
    weight:  (Cout, Cin, k)  float32     (trailing W=1 kernel dim squeezed)
    bias, gamma, beta, running_mean, running_var: (Cout,) float32
    returns: (N, Cout, T_out, V) in out_dtype (bf16 default for HBM roofline)
    """
    N, Cin, T, V = x.shape
    Cout = weight.shape[0]
    k, s, d = kernel_size, stride, dilation
    pad = (k + (k - 1) * (d - 1) - 1) // 2
    T_out = (T + 2 * pad - d * (k - 1) - 1) // s + 1

    # ---- static geometry ----------------------------------------------------
    Vp = _ceil_to(V, 16)                      # bf16 sublane pack -> free reshapes
    if Cout > 128:                            # 256-wide output tile (v6e/v7x MXU N)
        ct = 256
        Cout_pad = _ceil_to(Cout, 256)
    else:                                     # 128: v5e-native, small result tile
        ct = 128
        Cout_pad = 128
    rows_target = (128 * 1024) // (4 * ct)    # keep f32 result tile <= ~128 KiB
    t_chunk = max(1, min(T_out, rows_target // Vp))
    n_chunks = -(-T_out // t_chunk)
    T_out_pad = n_chunks * t_chunk
    q_max = ((k - 1) * d) // s
    Tg = q_max + T_out_pad                    # time-groups actually read
    Tp2 = _ceil_to(max(T + 2 * pad, s * Tg), s)
    Tg_alloc = Tp2 // s

    # ---- layout plumbing (channels-last, pad, phase-major split time axis) --
    # TODO(synk): in a full network keep activations channels-last + bf16
    # end-to-end so these boundary transposes/casts disappear.
    xcl = jnp.transpose(x, (0, 2, 3, 1))                           # (N,T,V,Cin)
    xcl = jnp.pad(xcl, ((0, 0), (pad, Tp2 - T - pad), (0, Vp - V), (0, 0)))
    xr = xcl.astype(jnp.bfloat16).reshape(N, Tg_alloc, s, Vp, Cin)
    xr = jnp.transpose(xr, (0, 2, 1, 3, 4))                        # (N,s,Tg,Vp,Cin)

    wr = jnp.transpose(weight, (2, 1, 0))                          # (k,Cin,Cout)
    wr = jnp.pad(wr, ((0, 0), (0, 0), (0, Cout_pad - Cout)))
    wr = wr.reshape(k * Cin, Cout_pad).astype(jnp.bfloat16)        # tap-major K

    scale = gamma / jnp.sqrt(running_var + eps)                    # fold BN (f32)
    shift = beta + (bias - running_mean) * scale
    scale = jnp.pad(scale, (0, Cout_pad - Cout)).reshape(1, Cout_pad)
    shift = jnp.pad(shift, (0, Cout_pad - Cout)).reshape(1, Cout_pad)
    scale = scale.astype(jnp.float32)
    shift = shift.astype(jnp.float32)

    # ---- pallas_call --------------------------------------------------------
    n_co = Cout_pad // ct
    grid = (N, n_co, n_chunks)                # time innermost: writeback pipelines

    x_block = (1, s, Tg_alloc, Vp, Cin)
    w_block = (k * Cin, ct)
    o_block = (1, t_chunk, Vp, ct)
    out_itemsize = jnp.dtype(out_dtype).itemsize

    x_bytes = int(np.prod(x_block)) * 2
    w_bytes = int(np.prod(w_block)) * 2
    o_bytes = int(np.prod(o_block)) * out_itemsize
    lhs_bytes = t_chunk * Vp * (k * Cin * 2 + ct * 4)              # lhs + f32 tile
    vmem_needed = 2 * (x_bytes + w_bytes + o_bytes + 4 * ct * 4) + lhs_bytes

    try:                                      # generation-aware VMEM ceiling
        vmem_cap = int(pltpu.get_tpu_info().vmem_capacity_bytes)
    except Exception:                         # noqa: BLE001
        vmem_cap = 64 * 1024 * 1024           # conservative: v7x per-TC VMEM
    vmem_limit = int(min(max(vmem_needed * 5 // 4, 32 * 1024 * 1024),
                         vmem_cap * 3 // 4))  # <= 48 MiB on v7x

    compiler_params = pltpu.CompilerParams(
        dimension_semantics=("parallel", "arbitrary", "arbitrary"),
        vmem_limit_bytes=vmem_limit)

    cost = pl.CostEstimate(
        flops=2 * N * T_out_pad * Vp * k * Cin * Cout_pad,
        transcendentals=0,
        bytes_accessed=N * x_bytes + N * n_co * w_bytes
        + N * T_out_pad * Vp * Cout_pad * out_itemsize)

    kernel = functools.partial(_temporal_conv_bn_kernel, k=k, stride=s,
                               dilation=d, t_chunk=t_chunk)

    out = pl.pallas_call(
        kernel,
        out_shape=jax.ShapeDtypeStruct((N, T_out_pad, Vp, Cout_pad), out_dtype),
        grid=grid,
        in_specs=[
            pl.BlockSpec(x_block, lambda n, co, tc: (n, 0, 0, 0, 0)),
            pl.BlockSpec(w_block, lambda n, co, tc: (0, co)),
            pl.BlockSpec((1, ct), lambda n, co, tc: (0, co)),
            pl.BlockSpec((1, ct), lambda n, co, tc: (0, co)),
        ],
        out_specs=pl.BlockSpec(o_block, lambda n, co, tc: (n, tc, 0, co)),
        compiler_params=compiler_params,
        cost_estimate=cost,
    )(xr, wr, scale, shift)

    # strip the Vp / Cout / T_out padding and return to the PyTorch layout
    out = out[:, :T_out, :V, :Cout]
    return jnp.transpose(out, (0, 3, 1, 2))


# ----------------------------------------------------------------------------
# Pure-JAX reference (mirrors the PyTorch module in eval mode)
# ----------------------------------------------------------------------------
def _reference(x, weight, bias, gamma, beta, running_mean, running_var,
               *, kernel_size, stride=1, dilation=1, eps=1e-5):
    pad = (kernel_size + (kernel_size - 1) * (dilation - 1) - 1) // 2
    y = lax.conv_general_dilated(
        x, weight[..., None],                       # (Cout, Cin, k, 1)
        window_strides=(stride, 1),
        padding=((pad, pad), (0, 0)),
        rhs_dilation=(dilation, 1),
        dimension_numbers=("NCHW", "OIHW", "NCHW"))
    y = y + bias[None, :, None, None]
    scale = gamma / jnp.sqrt(running_var + eps)
    return (y - running_mean[None, :, None, None]) * scale[None, :, None, None] \
        + beta[None, :, None, None]


# ----------------------------------------------------------------------------
if __name__ == "__main__":
    key = jax.random.PRNGKey(0)
    kx, kw, kb, kg, kbt, km, kv = jax.random.split(key, 7)

    # Small NTU-like shapes: V=25 joints (non-multiple of 16), Cout=96 (<128).
    N, Cin, T, V = 2, 64, 16, 25
    Cout, K = 96, 3

    x = jax.random.normal(kx, (N, Cin, T, V), jnp.float32)
    weight = 0.05 * jax.random.normal(kw, (Cout, Cin, K), jnp.float32)
    bias = 0.05 * jax.random.normal(kb, (Cout,), jnp.float32)
    gamma = 1.0 + 0.1 * jax.random.normal(kg, (Cout,), jnp.float32)
    beta = 0.1 * jax.random.normal(kbt, (Cout,), jnp.float32)
    running_mean = 0.1 * jax.random.normal(km, (Cout,), jnp.float32)
    running_var = 1.0 + 0.1 * jax.random.uniform(kv, (Cout,), jnp.float32)

    configs = [dict(kernel_size=K, stride=1, dilation=1),
               dict(kernel_size=K, stride=2, dilation=1),
               dict(kernel_size=K, stride=1, dilation=2)]
    for cfg in configs:
        out = temporal_conv_bn(x, weight, bias, gamma, beta,
                               running_mean, running_var, **cfg)
        out = jax.block_until_ready(out)
        ref = _reference(x, weight, bias, gamma, beta,
                         running_mean, running_var, **cfg)
        assert out.shape == ref.shape, (out.shape, ref.shape)
        out_f32 = out.astype(jnp.float32)
        assert bool(jnp.all(jnp.isfinite(out_f32)))
        max_err = float(jnp.max(jnp.abs(out_f32 - ref)))
        # bf16 matmul inputs + bf16 output; eval-mode BN folded. Loose tol.
        assert max_err < 5e-2, f"max abs error {max_err} for {cfg}"

    print("KERNEL_OK")
</pallas_src>

<mosaic_0001>
module attributes {stable_mosaic.version = 11 : i64} {
  func.func @_temporal_conv_bn_kernel(%arg0: i32, %arg1: i32, %arg2: i32, %arg3: memref<1x1x18x32x64xbf16, #tpu.memory_space<vmem>>, %arg4: memref<192x128xbf16, #tpu.memory_space<vmem>>, %arg5: memref<1x128xf32, #tpu.memory_space<vmem>>, %arg6: memref<1x128xf32, #tpu.memory_space<vmem>>, %arg7: memref<1x8x32x128xbf16, #tpu.memory_space<vmem>>) attributes {dimension_semantics = [#tpu.dimension_semantics<parallel>, #tpu.dimension_semantics<arbitrary>, #tpu.dimension_semantics<arbitrary>], iteration_bounds = array<i64: 2, 1, 2>, scalar_prefetch = 0 : i64, scratch_operands = 0 : i64, tpu.core_type = #tpu.core_type<tc>, window_params = [{transform_indices = @transform_0, window_bounds = array<i64: 1, 1, 18, 32, 64>}, {transform_indices = @transform_1, window_bounds = array<i64: 192, 128>}, {transform_indices = @transform_2, window_bounds = array<i64: 1, 128>}, {transform_indices = @transform_3, window_bounds = array<i64: 1, 128>}, {transform_indices = @transform_4, window_bounds = array<i64: 1, 8, 32, 128>}]} {
    %c8_i32 = arith.constant 8 : i32
    %0 = arith.muli %arg2, %c8_i32 : i32
    %1 = tpu.assume_multiple %0, 8 : i32
    %c0_i32 = arith.constant 0 : i32
    %2 = arith.addi %c0_i32, %1 : i32
    %c0 = arith.constant 0 : index
    %c0_0 = arith.constant 0 : index
    %3 = arith.index_cast %2 : i32 to index
    %c0_1 = arith.constant 0 : index
    %c0_2 = arith.constant 0 : index
    %4 = vector.load %arg3[%c0, %c0_0, %3, %c0_1, %c0_2] : memref<1x1x18x32x64xbf16, #tpu.memory_space<vmem>>, vector<1x1x8x32x64xbf16>
    %5 = vector.shape_cast %4 : vector<1x1x8x32x64xbf16> to vector<8x32x64xbf16>
    %6 = vector.shape_cast %5 : vector<8x32x64xbf16> to vector<256x64xbf16>
    %c1_i32 = arith.constant 1 : i32
    %7 = arith.addi %c1_i32, %1 : i32
    %c0_3 = arith.constant 0 : index
    %c0_4 = arith.constant 0 : index
    %8 = arith.index_cast %7 : i32 to index
    %c0_5 = arith.constant 0 : index
    %c0_6 = arith.constant 0 : index
    %9 = vector.load %arg3[%c0_3, %c0_4, %8, %c0_5, %c0_6] : memref<1x1x18x32x64xbf16, #tpu.memory_space<vmem>>, vector<1x1x8x32x64xbf16>
    %10 = vector.shape_cast %9 : vector<1x1x8x32x64xbf16> to vector<8x32x64xbf16>
    %11 = vector.shape_cast %10 : vector<8x32x64xbf16> to vector<256x64xbf16>
    %c2_i32 = arith.constant 2 : i32
    %12 = arith.addi %c2_i32, %1 : i32
    %c0_7 = arith.constant 0 : index
    %c0_8 = arith.constant 0 : index
    %13 = arith.index_cast %12 : i32 to index
    %c0_9 = arith.constant 0 : index
    %c0_10 = arith.constant 0 : index
    %14 = vector.load %arg3[%c0_7, %c0_8, %13, %c0_9, %c0_10] : memref<1x1x18x32x64xbf16, #tpu.memory_space<vmem>>, vector<1x1x8x32x64xbf16>
    %15 = vector.shape_cast %14 : vector<1x1x8x32x64xbf16> to vector<8x32x64xbf16>
    %16 = vector.shape_cast %15 : vector<8x32x64xbf16> to vector<256x64xbf16>
    %17 = tpu.concatenate %6, %11, %16 in 1 : vector<256x64xbf16>, vector<256x64xbf16>, vector<256x64xbf16> -> vector<256x192xbf16>
    %c0_11 = arith.constant 0 : index
    %c0_12 = arith.constant 0 : index
    %18 = vector.load %arg4[%c0_11, %c0_12] : memref<192x128xbf16, #tpu.memory_space<vmem>>, vector<192x128xbf16>
    %cst = arith.constant dense<0.000000e+00> : vector<256x128xf32>
    %19 = tpu.matmul %17, %18, %cst {dimension_numbers = #tpu.dot_dimension_numbers<[1], [0], [0], [1], [0, 0, 1, 1], [], []>} : vector<256x192xbf16>, vector<192x128xbf16>, vector<256x128xf32> -> vector<256x128xf32>
    %c0_13 = arith.constant 0 : index
    %c0_14 = arith.constant 0 : index
    %20 = vector.load %arg5[%c0_13, %c0_14] : memref<1x128xf32, #tpu.memory_space<vmem>>, vector<1x128xf32>
    %21 = vector.broadcast %20 : vector<1x128xf32> to vector<256x128xf32>
    %22 = arith.mulf %19, %21 : vector<256x128xf32>
    %c0_15 = arith.constant 0 : index
    %c0_16 = arith.constant 0 : index
    %23 = vector.load %arg6[%c0_15, %c0_16] : memref<1x128xf32, #tpu.memory_space<vmem>>, vector<1x128xf32>
    %24 = vector.broadcast %23 : vector<1x128xf32> to vector<256x128xf32>
    %25 = arith.addf %22, %24 : vector<256x128xf32>
    %26 = vector.shape_cast %25 : vector<256x128xf32> to vector<8x32x128xf32>
    %27 = arith.truncf %26 : vector<8x32x128xf32> to vector<8x32x128xbf16>
    %c0_17 = arith.constant 0 : index
    %c0_18 = arith.constant 0 : index
    %c0_19 = arith.constant 0 : index
    %c0_20 = arith.constant 0 : index
    %28 = vector.load %arg7[%c0_17, %c0_18, %c0_19, %c0_20] : memref<1x8x32x128xbf16, #tpu.memory_space<vmem>>, vector<1x8x32x128xbf16>
    %29 = vector.shape_cast %28 : vector<1x8x32x128xbf16> to vector<8x32x128xbf16>
    %30 = vector.shape_cast %27 : vector<8x32x128xbf16> to vector<1x8x32x128xbf16>
    tpu.vector_store %arg7[%c0_17, %c0_18, %c0_19, %c0_20], %30 {strides = array<i32>} : memref<1x8x32x128xbf16, #tpu.memory_space<vmem>>, vector<1x8x32x128xbf16>,
    return
  }
  func.func @transform_0(%arg0: i32, %arg1: i32, %arg2: i32) -> (i32, i32, i32, i32, i32) {
    %c0_i32 = arith.constant 0 : i32
    %c0_i32_0 = arith.constant 0 : i32
    %c0_i32_1 = arith.constant 0 : i32
    %c0_i32_2 = arith.constant 0 : i32
    %c0_i32_3 = arith.constant 0 : i32
    return %arg0, %c0_i32, %c0_i32_0, %c0_i32_1, %c0_i32_2 : i32, i32, i32, i32, i32
  }
  func.func @transform_1(%arg0: i32, %arg1: i32, %arg2: i32) -> (i32, i32) {
    %c0_i32 = arith.constant 0 : i32
    %c0_i32_0 = arith.constant 0 : i32
    return %c0_i32, %arg1 : i32, i32
  }
  func.func @transform_2(%arg0: i32, %arg1: i32, %arg2: i32) -> (i32, i32) {
    %c0_i32 = arith.constant 0 : i32
    %c0_i32_0 = arith.constant 0 : i32
    return %c0_i32, %arg1 : i32, i32
  }
  func.func @transform_3(%arg0: i32, %arg1: i32, %arg2: i32) -> (i32, i32) {
    %c0_i32 = arith.constant 0 : i32
    %c0_i32_0 = arith.constant 0 : i32
    return %c0_i32, %arg1 : i32, i32
  }
  func.func @transform_4(%arg0: i32, %arg1: i32, %arg2: i32) -> (i32, i32, i32, i32) {
    %c0_i32 = arith.constant 0 : i32
    %c0_i32_0 = arith.constant 0 : i32
    return %arg0, %arg2, %c0_i32, %arg1 : i32, i32, i32, i32
  }
}

</mosaic_0001>

<bundles_post_ra>
// kernel: temporal_conv_bn.1
= control target key start
LH: loop header
LB: loop body
LE: loop exit
PB: predicated region body
PF: predicated region fallthrough
CT: control target
= control target key end

     0   :  { %s1945_s15 = smov 0   ;;  %s1947_s16 = smov 0   ;;  %s2254_s0 = inlined_call_operand.vmem [shape: bf16[2,1,18,32,64], index: 0, kind: input, shape index: {}]   ;;  %s2255_s1 = inlined_call_operand.vmem [shape: bf16[192,128], index: 1, kind: input, shape index: {}]   ;;  %s2256_s2 = inlined_call_operand.vmem [shape: f32[1,128], index: 2, kind: input, shape index: {}]   ;;  %s2257_s3 = inlined_call_operand.vmem [shape: f32[1,128], index: 3, kind: input, shape index: {}]   ;;  %s2258_s4 = inlined_call_operand.vmem [shape: bf16[2,16,32,128], index: 4, kind: output, shape index: {}]  }
   0x1   :  { %s1949_s17 = smov 0   ;;  %s1951_s18 = smov 0  }
   0x2   :  { %s1953_s19 = smov 0  }
   0x3 LB: > { %s26_s20 = sadd.s32 1, %s1908_s17  ;;  %s33_s21 = sadd.s32 1, %s1912_s18  ;;  %s1916_s19 = sphi %s1953_s19, %s14_s19   ;;  %s1912_s18 = sphi %s1951_s18, %s2262_s18   ;;  %s1908_s17 = sphi %s1949_s17, %s2261_s17   ;;  %s1904_s16 = sphi %s1947_s16, %s2260_s16   ;;  %s1900_s15 = sphi %s1945_s15, %s2259_s15  }
   0x4   : > { %p27_p0 = scmp.ge.s32.totalorder %s26_s20, 2  ;;  %p1431_p1 = scmp.ge.s32.totalorder %s1916_s19, 1 }
   0x5   : > { %p210_p2 = scmp.lt.s32.totalorder %s1916_s19, 5 }
   0x6   : > { %s2264_s20 = smov (%p27_p0, %s26_s20), 0  ;;  %s2266_s21 = smov (!%p27_p0, %s33_s21), %s1912_s18 }
   0x7   : > { %p211_p3 = pnand %p1431_p1, %p210_p2  ;;  %p35_p4 = scmp.ge.s32.totalorder %s2266_s21, 2 }
   0x8   : > { %p254_p5 = scmp.lt.s32.totalorder (!%p211_p3), %s1904_s16, 1  ;;  %v1834_v0 = vld [vmem:[%s2255_s1] sm:$0xff] (!%p211_p3)   ;;  %v1918_v1 = vmov (!%p211_p3), 0   ;;  %v1835_v2 = vld [vmem:[%s2255_s1 + $0x8] sm:$0xff] (!%p211_p3)   ;;  %s1621_s27 = sshll.u32 (!%p211_p3), %s1900_s15, 7  ;;  %v1836_v3 = vld [vmem:[%s2255_s1 + $0x10] sm:$0xff] (!%p211_p3)  }
   0x9   : > { %s2268_s21 = smov (%p35_p4, %s2266_s21), 0  ;;  %214 = sbr.rel (%p211_p3) target bundleno = 419 (0x1a3), region = 36 }
   0xa   : > { %873 = vmatprep.subr.bf16.mxu0 (!%p211_p3), %v1918_v1  ;;  %1751 = vmatprep.subr.bf16.mxu1 (!%p211_p3), %v1918_v1  ;;  %v1837_v5 = vld [vmem:[%s2255_s1 + $0x18] sm:$0xff] (!%p211_p3)   ;;  %s1919_s10 = smov (!%p211_p3), 64   ;;  %v1838_v9 = vld [vmem:[%s2255_s1 + $0x20] sm:$0xff] (!%p211_p3)   ;;  %v1839_v12 = vld [vmem:[%s2255_s1 + $0x28] sm:$0xff] (!%p211_p3)   ;;  %vm664_vm0 = vcmask (!%p211_p3), 523264   ;;  %s1433_s9 = sshll.u32 (!%p211_p3), %s1900_s15, 3 }
   0xb   : > { %874 = vmatpush1.bf16.msra.mxu0 (!%p211_p3), %v1834_v0  ;;  %1763 = vmatpush1.bf16.msra.mxu1 (!%p211_p3), %v1834_v0  ;;  %v1840_v15 = vld [vmem:[%s2255_s1 + $0x30] sm:$0xff] (!%p211_p3)   ;;  %v1841_v19 = vld [vmem:[%s2255_s1 + $0x38] sm:$0xff] (!%p211_p3)   ;;  %v1842_v23 = vld [vmem:[%s2255_s1 + $0x40] sm:$0xff] (!%p211_p3)   ;;  %p272_p6 = scmp.lt.s32.totalorder (!%p211_p3), %s1433_s9, 15 }
   0xc   : > { %875 = vmatprep.subr.bf16.mxu0 (!%p211_p3), %v1918_v1  ;;  %1752 = vmatprep.subr.bf16.mxu1 (!%p211_p3), %v1918_v1  ;;  %v1843_v27 = vld [vmem:[%s2255_s1 + $0x48] sm:$0xff] (!%p211_p3)   ;;  %v1844_v29 = vld [vmem:[%s2255_s1 + $0x50] sm:$0xff] (!%p211_p3)   ;;  %v1845_v30 = vld [vmem:[%s2255_s1 + $0x58] sm:$0xff] (!%p211_p3)  }
   0xf   : > { %876 = vmatpush1.bf16.msra.mxu0 (!%p211_p3), %v1835_v2  ;;  %1764 = vmatpush1.bf16.msra.mxu1 (!%p211_p3), %v1835_v2 }
  0x10   : > { %s2270_s16 = smov (!%p254_p5, %s1904_s16), 1  ;;  %877 = vmatprep.subr.bf16.mxu0 %v1918_v1  ;;  %1753 = vmatprep.subr.bf16.mxu1 %v1918_v1  ;;  %s2272_s9 = smov (!%p272_p6, %s1433_s9), 15 }
  0x11   : > { %s1775_s26 = smul.u32 288, %s2270_s16  ;;  %s1435_s11 = sshll.u32 %s2270_s16, 6 }
  0x13   : > { %s258_s30 = scalar_lea.vmem %s2254_s0, %s1775_s26  ;;  %878 = vmatpush1.bf16.msra.mxu0 %v1836_v3  ;;  %1765 = vmatpush1.bf16.msra.mxu1 %v1836_v3 }
  0x14   : > { %s1997_s7 = scalar_lea.vmem %s258_s30, %s1621_s27  ;;  %879 = vmatprep.subr.bf16.mxu0 %v1918_v1  ;;  %1754 = vmatprep.subr.bf16.mxu1 %v1918_v1 }
  0x15   : > { %v1818_v4 = vld [vmem:[%s1997_s7 + $0x10] sm:$0xff]   ;;  %v1820_v7 = vld [vmem:[%s1997_s7 + $0x18] sm:$0xff]   ;;  %v1822_v10 = vld [vmem:[%s1997_s7 + $0x20] sm:$0xff]  }
  0x16   : > { %v1819_v6 = vld [vmem:[%s1997_s7 + $0x50] sm:$0xff]   ;;  %552 = vrot.lane.b32.xlu0 %v1818_v4, %s1919_s10  ;;  %554 = vrot.lane.b32.xlu1 %v1820_v7, %s1919_s10  ;;  %v1821_v8 = vld [vmem:[%s1997_s7 + $0x58] sm:$0xff]  }
  0x17   : > { %880 = vmatpush1.bf16.msra.mxu0 %v1837_v5  ;;  %1766 = vmatpush1.bf16.msra.mxu1 %v1837_v5  ;;  %v1823_v11 = vld [vmem:[%s1997_s7 + $0x60] sm:$0xff]   ;;  %v1824_v13 = vld [vmem:[%s1997_s7 + $0x28] sm:$0xff]   ;;  %v1826_v16 = vld [vmem:[%s1997_s7 + $0x30] sm:$0xff]  }
  0x18   : > { %881 = vmatprep.subr.bf16.mxu0 %v1918_v1  ;;  %1755 = vmatprep.subr.bf16.mxu1 %v1918_v1  ;;  %v1825_v14 = vld [vmem:[%s1997_s7 + $0x68] sm:$0xff]   ;;  %v1827_v17 = vld [vmem:[%s1997_s7 + $0x70] sm:$0xff]   ;;  %v1828_v18 = vld [vmem:[%s1997_s7 + $0x38] sm:$0xff]  }
  0x19   : > { %v1829_v20 = vld [vmem:[%s1997_s7 + $0x78] sm:$0xff]   ;;  %v1830_v21 = vld [vmem:[%s1997_s7 + $0x40] sm:$0xff]   ;;  %v1832_v26 = vld [vmem:[%s1997_s7 + $0x48] sm:$0xff]  }
  0x1a   : > { %568 = vrot.lane.b32.xlu0 %v1819_v6, %s1919_s10  ;;  %570 = vrot.lane.b32.xlu1 %v1821_v8, %s1919_s10  ;;  %v1846_v22 = vld [vmem:[%s1997_s7 + $0x20] sm:$0xff]   ;;  %v1833_v28 = vld [vmem:[%s1997_s7 + $0x88] sm:$0xff]  }
  0x1b   : > { %882 = vmatpush1.bf16.msra.mxu0 %v1838_v9  ;;  %1767 = vmatpush1.bf16.msra.mxu1 %v1838_v9  ;;  %v1848_v24 = vld [vmem:[%s1997_s7 + $0x60] sm:$0xff]   ;;  %v1850_v32 = vld [vmem:[%s1997_s7 + $0x28] sm:$0xff]   ;;  %v1854_v43 = vld [vmem:[%s1997_s7 + $0x30] sm:$0xff]  }
  0x1c   : > { %883 = vmatprep.subr.bf16.mxu0 %v1918_v1  ;;  %1756 = vmatprep.subr.bf16.mxu1 %v1918_v1  ;;  %v1831_v25 = vld [vmem:[%s1997_s7 + $0x80] sm:$0xff]   ;;  %v1851_v37 = vld [vmem:[%s1997_s7 + $0x8] sm:$0xff]   ;;  %v1855_v46 = vld [vmem:[%s1997_s7 + $0x10] sm:$0xff]  }
  0x1d   : > { %1568 = vmatprep.mubr.msk.bf16.mxu0 %vm664_vm0, %v1846_v22  ;;  %1576 = vmatprep.mubr.msk.bf16.mxu1 %vm664_vm0, %v1848_v24  ;;  %v1847_v31 = vld [vmem:[%s1997_s7] sm:$0xff]   ;;  %v1852_v38 = vld [vmem:[%s1997_s7 + $0x68] sm:$0xff]   ;;  %v1856_v47 = vld [vmem:[%s1997_s7 + $0x70] sm:$0xff]  }
  0x1e   : > { %556 = vrot.lane.b32.xlu0 %v1822_v10, %s1919_s10  ;;  %572 = vrot.lane.b32.xlu1 %v1823_v11, %s1919_s10  ;;  %v1849_v35 = vld [vmem:[%s1997_s7 + $0x40] sm:$0xff]   ;;  %v1853_v42 = vld [vmem:[%s1997_s7 + $0x48] sm:$0xff]  }
  0x1f   : > { %884 = vmatpush1.bf16.msra.mxu0 %v1839_v12  ;;  %1768 = vmatpush1.bf16.msra.mxu1 %v1839_v12  ;;  %v1857_v50 = vld [vmem:[%s1997_s7 + $0x50] sm:$0xff]   ;;  %v1858_v51 = vld [vmem:[%s1997_s7 + $0x38] sm:$0xff]   ;;  %v1862_v59 = vld [vmem:[%s1997_s7 + $0x40] sm:$0xff]  }
  0x20   : > { %885 = vmatprep.subr.bf16.mxu0 %v1918_v1  ;;  %1757 = vmatprep.subr.bf16.mxu1 %v1918_v1  ;;  %v1859_v54 = vld [vmem:[%s1997_s7 + $0x18] sm:$0xff]   ;;  %v1863_v62 = vld [vmem:[%s1997_s7 + $0x20] sm:$0xff]   ;;  %v1866_v3 = vld [vmem:[%s1997_s7 + $0x48] sm:$0xff]  }
  0x21   : > { %v1860_v55 = vld [vmem:[%s1997_s7 + $0x78] sm:$0xff]   ;;  %v1864_v63 = vld [vmem:[%s1997_s7 + $0x80] sm:$0xff]   ;;  %v1867_v6 = vld [vmem:[%s1997_s7 + $0x28] sm:$0xff]  }
  0x22   : > { %558 = vrot.lane.b32.xlu0 %v1824_v13, %s1919_s10  ;;  %574 = vrot.lane.b32.xlu1 %v1825_v14, %s1919_s10  ;;  %v1861_v58 = vld [vmem:[%s1997_s7 + $0x58] sm:$0xff]   ;;  %v1865_v2 = vld [vmem:[%s1997_s7 + $0x60] sm:$0xff]  }
  0x23   : > { %886 = vmatpush1.bf16.msra.mxu0 %v1840_v15  ;;  %1769 = vmatpush1.bf16.msra.mxu1 %v1840_v15  ;;  %v1868_v7 = vld [vmem:[%s1997_s7 + $0x88] sm:$0xff]   ;;  %v1870_v11 = vld [vmem:[%s1997_s7 + $0x50] sm:$0xff]   ;;  %v1875_v22 = vld [vmem:[%s1997_s7 + $0x38] sm:$0xff]  }
  0x24   : > { %887 = vmatprep.subr.bf16.mxu0 %v1918_v1  ;;  %1758 = vmatprep.subr.bf16.mxu1 %v1918_v1  ;;  %v1869_v10 = vld [vmem:[%s1997_s7 + $0x68] sm:$0xff]   ;;  %v1871_v14 = vld [vmem:[%s1997_s7 + $0x30] sm:$0xff]  }
  0x25   : > { %v1872_v15 = vld [vmem:[%s1997_s7 + $0x90] sm:$0xff]  }
  0x26   : > { %560 = vrot.lane.b32.xlu0 %v1826_v16, %s1919_s10  ;;  %576 = vrot.lane.b32.xlu1 %v1827_v17, %s1919_s10 }
  0x27   : > { %888 = vmatpush1.bf16.msra.mxu0 %v1841_v19  ;;  %1770 = vmatpush1.bf16.msra.mxu1 %v1841_v19  ;;  %v1874_v19 = vld [vmem:[%s1997_s7 + $0x58] sm:$0xff]  }
  0x28   : > { %889 = vmatprep.subr.bf16.mxu0 %v1918_v1  ;;  %1759 = vmatprep.subr.bf16.mxu1 %v1918_v1 }
  0x2a   : > { %562 = vrot.lane.b32.xlu0 %v1828_v18, %s1919_s10  ;;  %578 = vrot.lane.b32.xlu1 %v1829_v20, %s1919_s10  ;;  %v1873_v18 = vld [vmem:[%s1997_s7 + $0x70] sm:$0xff]  }
  0x2b   : > { %890 = vmatpush1.bf16.msra.mxu0 %v1842_v23  ;;  %1771 = vmatpush1.bf16.msra.mxu1 %v1842_v23  ;;  %v1876_v23 = vld [vmem:[%s1997_s7 + $0x98] sm:$0xff]  }
  0x2c   : > { %891 = vmatprep.subr.bf16.mxu0 %v1918_v1  ;;  %1760 = vmatprep.subr.bf16.mxu1 %v1918_v1 }
  0x2e   : > { %564 = vrot.lane.b32.xlu0 %v1830_v21, %s1919_s10  ;;  %580 = vrot.lane.b32.xlu1 %v1831_v25, %s1919_s10 }
  0x2f   : > { %892 = vmatpush1.bf16.msra.mxu0 %v1843_v27  ;;  %1772 = vmatpush1.bf16.msra.mxu1 %v1843_v27 }
  0x30   : > { %893 = vmatprep.subr.bf16.mxu0 %v1918_v1  ;;  %1761 = vmatprep.subr.bf16.mxu1 %v1918_v1 }
  0x32   : > { %566 = vrot.lane.b32.xlu0 %v1832_v26, %s1919_s10  ;;  %582 = vrot.lane.b32.xlu1 %v1833_v28, %s1919_s10  ;;  %v1877_v26 = vld [vmem:[%s1997_s7 + $0x78] sm:$0xff]   ;;  %s1434_s10 = sshll.u32 %s2272_s9, 2 }
  0x33   : > { %894 = vmatpush1.bf16.msra.mxu0 %v1844_v29  ;;  %1773 = vmatpush1.bf16.msra.mxu1 %v1844_v29  ;;  %v2147_v29 = vld [vmem:[%s2256_s2] ss:$0 sm:$0xff]  ;;  %s279_s14 = sadd.s32 %s1435_s11, %s1434_s10 }
  0x34   : > { %895 = vmatprep.subr.bf16.mxu0 %v1918_v1  ;;  %1762 = vmatprep.subr.bf16.mxu1 %v1918_v1  ;;  %s1436_s15 = sshll.u32 %s279_s14, 2 }
  0x35   : > { %s2162_s24 = scalar_lea.vmem %s2258_s4, %s1436_s15 }
  0x37   : > { %896 = vmatpush1.bf16.msra.mxu0 %v1845_v30  ;;  %1774 = vmatpush1.bf16.msra.mxu1 %v1845_v30 }
  0x88   : > { %v553_v33 = vpop.permute.xlu0 %552  ;;  %v555_v36 = vpop.permute.xlu1 %554 }
  0x89   : > { %v667_v34 = vsel %vm664_vm0, %v1847_v31, %v553_v33  ;;  %v671_v41 = vsel %vm664_vm0, %v1851_v37, %v555_v36  ;;  %v2153_v33 = vld [vmem:[%s2257_s3] ss:$0 sm:$0xff] }
  0x8a   : > { %906 = vmatmul.mubr.bf16.vlgmr.msra.gmra.mrb[0].mxu0 %v667_v34 }
  0x8b   : > { %1569 = vmatprep.mubr.msk.bf16.mxu0 %vm664_vm0, %v1850_v32 }
  0x8c   : > { %v569_v39 = vpop.permute.xlu0 %568  ;;  %v571_v44 = vpop.permute.xlu1 %570 }
  0x8d   : > { %v699_v40 = vsel %vm664_vm0, %v1849_v35, %v569_v39  ;;  %v703_v45 = vsel %vm664_vm0, %v1853_v42, %v571_v44 }
  0x8e   : > { %970 = vmatmul.mubr.bf16.vlgmr.msra.gmra.mrb[0].mxu1 %v699_v40 }
  0x8f   : > { %1577 = vmatprep.mubr.msk.bf16.mxu1 %vm664_vm0, %v1852_v38 }
  0x90   : > { %v557_v48 = vpop.permute.xlu0 %556  ;;  %v573_v52 = vpop.permute.xlu1 %572 }
  0x91   : > { %v675_v49 = vsel %vm664_vm0, %v1855_v46, %v557_v48  ;;  %v707_v53 = vsel %vm664_vm0, %v1857_v50, %v573_v52 }
  0x92   : > { %914 = vmatmul.mubr.bf16.gmra.mrb[4].mxu0 %v671_v41 }
  0x93   : > { %1570 = vmatprep.mubr.msk.bf16.mxu0 %vm664_vm0, %v1854_v43 }
  0x94   : > { %v559_v56 = vpop.permute.xlu0 %558  ;;  %v575_v60 = vpop.permute.xlu1 %574 }
  0x95   : > { %v679_v57 = vsel %vm664_vm0, %v1859_v54, %v559_v56  ;;  %v711_v61 = vsel %vm664_vm0, %v1861_v58, %v575_v60 }
  0x96   : > { %978 = vmatmul.mubr.bf16.gmra.mrb[4].mxu1 %v703_v45 }
  0x97   : > { %1578 = vmatprep.mubr.msk.bf16.mxu1 %vm664_vm0, %v1856_v47 }
  0x98   : > { %v561_v0 = vpop.permute.xlu0 %560  ;;  %v577_v4 = vpop.permute.xlu1 %576 }
  0x99   : > { %v683_v1 = vsel %vm664_vm0, %v1863_v62, %v561_v0  ;;  %v715_v5 = vsel %vm664_vm0, %v1865_v2, %v577_v4 }
  0x9a   : > { %922 = vmatmul.mubr.bf16.gmra.mrb[8].mxu0 %v675_v49 }
  0x9b   : > { %1571 = vmatprep.mubr.msk.bf16.mxu0 %vm664_vm0, %v1858_v51 }
  0x9c   : > { %v563_v8 = vpop.permute.xlu0 %562  ;;  %v579_v12 = vpop.permute.xlu1 %578 }
  0x9d   : > { %v687_v9 = vsel %vm664_vm0, %v1867_v6, %v563_v8  ;;  %v719_v13 = vsel %vm664_vm0, %v1869_v10, %v579_v12 }
  0x9e   : > { %986 = vmatmul.mubr.bf16.gmra.mrb[8].mxu1 %v707_v53 }
  0x9f   : > { %1579 = vmatprep.mubr.msk.bf16.mxu1 %vm664_vm0, %v1860_v55 }
  0xa0   : > { %v565_v16 = vpop.permute.xlu0 %564  ;;  %v581_v20 = vpop.permute.xlu1 %580 }
  0xa1   : > { %v691_v17 = vsel %vm664_vm0, %v1871_v14, %v565_v16  ;;  %v723_v21 = vsel %vm664_vm0, %v1873_v18, %v581_v20 }
  0xa2   : > { %930 = vmatmul.mubr.bf16.gmra.mrb[12].mxu0 %v679_v57 }
  0xa3   : > { %1572 = vmatprep.mubr.msk.bf16.mxu0 %vm664_vm0, %v1862_v59 }
  0xa4   : > { %v567_v24 = vpop.permute.xlu0 %566  ;;  %v583_v27 = vpop.permute.xlu1 %582 }
  0xa5   : > { %v695_v25 = vsel %vm664_vm0, %v1875_v22, %v567_v24  ;;  %v727_v28 = vsel %vm664_vm0, %v1877_v26, %v583_v27 }
  0xa6   : > { %994 = vmatmul.mubr.bf16.gmra.mrb[12].mxu1 %v711_v61 }
  0xa7   : > { %1580 = vmatprep.mubr.msk.bf16.mxu1 %vm664_vm0, %v1864_v63 }
  0xaa   : > { %938 = vmatmul.mubr.bf16.gmra.mrb[16].mxu0 %v683_v1 }
  0xab   : > { %1573 = vmatprep.mubr.msk.bf16.mxu0 %vm664_vm0, %v1866_v3 }
  0xae   : > { %1002 = vmatmul.mubr.bf16.gmra.mrb[16].mxu1 %v715_v5 }
  0xaf   : > { %1581 = vmatprep.mubr.msk.bf16.mxu1 %vm664_vm0, %v1868_v7 }
  0xb2   : > { %946 = vmatmul.mubr.bf16.gmra.mrb[20].mxu0 %v687_v9 }
  0xb3   : > { %1574 = vmatprep.mubr.msk.bf16.mxu0 %vm664_vm0, %v1870_v11 }
  0xb6   : > { %1010 = vmatmul.mubr.bf16.gmra.mrb[20].mxu1 %v719_v13 }
  0xb7   : > { %1582 = vmatprep.mubr.msk.bf16.mxu1 %vm664_vm0, %v1872_v15 }
  0xba   : > { %954 = vmatmul.mubr.bf16.gmra.mrb[24].mxu0 %v691_v17 }
  0xbb   : > { %1575 = vmatprep.mubr.msk.bf16.mxu0 %vm664_vm0, %v1874_v19 }
  0xbe   : > { %1018 = vmatmul.mubr.bf16.gmra.mrb[24].mxu1 %v723_v21 }
  0xbf   : > { %1583 = vmatprep.mubr.msk.bf16.mxu1 %vm664_vm0, %v1876_v23 }
  0xc2   : > { %962 = vmatmul.mubr.bf16.gmra.mrb[28].mxu0 %v695_v25 }
  0xc6   : > { %1026 = vmatmul.mubr.bf16.gmra.mrb[28].mxu1 %v727_v28 }
 0x15d   : > { %v907_v30 = vpop.f32.mrb[0].mxu0 }
 0x15e   : > { %v1041_v31 = vmul.f32 %v2147_v29, %v907_v30  ;;  %v909_v32 = vpop.f32.mrb[1].mxu0 }
 0x15f   : > { %v910_v34 = vpop.f32.mrb[2].mxu0 }
 0x160   : > { %v1042_v35 = vmul.f32 %v2147_v29, %v910_v34  ;;  %v912_v36 = vpop.f32.mrb[3].mxu0  ;;  %v1080_v38 = vadd.f32 %v2153_v33, %v1041_v31 }
 0x161   : > { %v971_v37 = vpop.f32.mrb[0].mxu1 }
 0x162   : > { %v1081_v39 = vadd.f32 %v2153_v33, %v1042_v35  ;;  %v1057_v40 = vmul.f32 %v2147_v29, %v971_v37  ;;  %v973_v41 = vpop.f32.mrb[1].mxu1 }
 0x163   : > { %v974_v42 = vpop.f32.mrb[2].mxu1 }
 0x164   : > { %v1659_v43 = vpack.c.bf16 %v1081_v39, %v1080_v38  ;;  %v1058_v44 = vmul.f32 %v2147_v29, %v974_v42  ;;  %v976_v45 = vpop.f32.mrb[3].mxu1  ;;  %v1096_v47 = vadd.f32 %v2153_v33, %v1057_v40 }
 0x165   : > { %v915_v46 = vpop.f32.mrb[4].mxu0 }
 0x166   : > { %1660 = vst [vmem:[%s2162_s24] sm:$0xff] %v1659_v43   ;;  %v1097_v48 = vadd.f32 %v2153_v33, %v1058_v44  ;;  %v1043_v49 = vmul.f32 %v2147_v29, %v915_v46  ;;  %v917_v50 = vpop.f32.mrb[5].mxu0 }
 0x167   : > { %v918_v51 = vpop.f32.mrb[6].mxu0 }
 0x168   : > { %v1699_v52 = vpack.c.bf16 %v1097_v48, %v1096_v47  ;;  %v1044_v53 = vmul.f32 %v2147_v29, %v918_v51  ;;  %v920_v54 = vpop.f32.mrb[7].mxu0  ;;  %v1082_v56 = vadd.f32 %v2153_v33, %v1043_v49 }
 0x169   : > { %v979_v55 = vpop.f32.mrb[4].mxu1 }
 0x16a   : > { %1743 = vst [vmem:[%s2162_s24 + $0x40] sm:$0xff] %v1699_v52   ;;  %v1083_v57 = vadd.f32 %v2153_v33, %v1044_v53  ;;  %v1059_v58 = vmul.f32 %v2147_v29, %v979_v55  ;;  %v981_v59 = vpop.f32.mrb[5].mxu1 }
 0x16b   : > { %v982_v60 = vpop.f32.mrb[6].mxu1 }
 0x16c   : > { %v1664_v61 = vpack.c.bf16 %v1083_v57, %v1082_v56  ;;  %v1060_v62 = vmul.f32 %v2147_v29, %v982_v60  ;;  %v984_v63 = vpop.f32.mrb[7].mxu1  ;;  %v1098_v1 = vadd.f32 %v2153_v33, %v1059_v58 }
 0x16d   : > { %v923_v0 = vpop.f32.mrb[8].mxu0 }
 0x16e   : > { %1736 = vst [vmem:[%s2162_s24 + $0x8] sm:$0xff] %v1664_v61   ;;  %v1099_v2 = vadd.f32 %v2153_v33, %v1060_v62  ;;  %v1045_v3 = vmul.f32 %v2147_v29, %v923_v0  ;;  %v925_v4 = vpop.f32.mrb[9].mxu0 }
 0x16f   : > { %v926_v5 = vpop.f32.mrb[10].mxu0 }
 0x170   : > { %v1704_v6 = vpack.c.bf16 %v1099_v2, %v1098_v1  ;;  %v1084_v7 = vadd.f32 %v2153_v33, %v1045_v3  ;;  %v1046_v8 = vmul.f32 %v2147_v29, %v926_v5  ;;  %v928_v9 = vpop.f32.mrb[11].mxu0 }
 0x171   : > { %v987_v10 = vpop.f32.mrb[8].mxu1 }
 0x172   : > { %1744 = vst [vmem:[%s2162_s24 + $0x48] sm:$0xff] %v1704_v6   ;;  %v1085_v11 = vadd.f32 %v2153_v33, %v1046_v8  ;;  %v1061_v12 = vmul.f32 %v2147_v29, %v987_v10  ;;  %v989_v13 = vpop.f32.mrb[9].mxu1 }
 0x173   : > { %v990_v14 = vpop.f32.mrb[10].mxu1 }
 0x174   : > { %v1669_v15 = vpack.c.bf16 %v1085_v11, %v1084_v7  ;;  %v1062_v16 = vmul.f32 %v2147_v29, %v990_v14  ;;  %v992_v17 = vpop.f32.mrb[11].mxu1  ;;  %v1100_v19 = vadd.f32 %v2153_v33, %v1061_v12 }
 0x175   : > { %v931_v18 = vpop.f32.mrb[12].mxu0 }
 0x176   : > { %1737 = vst [vmem:[%s2162_s24 + $0x10] sm:$0xff] %v1669_v15   ;;  %v1101_v20 = vadd.f32 %v2153_v33, %v1062_v16  ;;  %v1047_v21 = vmul.f32 %v2147_v29, %v931_v18  ;;  %v933_v22 = vpop.f32.mrb[13].mxu0 }
 0x177   : > { %v934_v23 = vpop.f32.mrb[14].mxu0 }
 0x178   : > { %v1709_v24 = vpack.c.bf16 %v1101_v20, %v1100_v19  ;;  %v1086_v25 = vadd.f32 %v2153_v33, %v1047_v21  ;;  %v1048_v26 = vmul.f32 %v2147_v29, %v934_v23  ;;  %v936_v27 = vpop.f32.mrb[15].mxu0 }
 0x179   : > { %v995_v28 = vpop.f32.mrb[12].mxu1 }
 0x17a   : > { %1745 = vst [vmem:[%s2162_s24 + $0x50] sm:$0xff] %v1709_v24   ;;  %v1087_v30 = vadd.f32 %v2153_v33, %v1048_v26  ;;  %v1063_v31 = vmul.f32 %v2147_v29, %v995_v28  ;;  %v997_v32 = vpop.f32.mrb[13].mxu1 }
 0x17b   : > { %v998_v34 = vpop.f32.mrb[14].mxu1 }
 0x17c   : > { %v1674_v35 = vpack.c.bf16 %v1087_v30, %v1086_v25  ;;  %v1064_v36 = vmul.f32 %v2147_v29, %v998_v34  ;;  %v1000_v37 = vpop.f32.mrb[15].mxu1  ;;  %v1102_v39 = vadd.f32 %v2153_v33, %v1063_v31 }
 0x17d   : > { %v939_v38 = vpop.f32.mrb[16].mxu0 }
 0x17e   : > { %1738 = vst [vmem:[%s2162_s24 + $0x18] sm:$0xff] %v1674_v35   ;;  %v1103_v40 = vadd.f32 %v2153_v33, %v1064_v36  ;;  %v1049_v41 = vmul.f32 %v2147_v29, %v939_v38  ;;  %v941_v42 = vpop.f32.mrb[17].mxu0 }
 0x17f   : > { %v942_v43 = vpop.f32.mrb[18].mxu0 }
 0x180   : > { %v1714_v44 = vpack.c.bf16 %v1103_v40, %v1102_v39  ;;  %v1088_v45 = vadd.f32 %v2153_v33, %v1049_v41  ;;  %v1050_v46 = vmul.f32 %v2147_v29, %v942_v43  ;;  %v944_v47 = vpop.f32.mrb[19].mxu0 }
 0x181   : > { %v1003_v48 = vpop.f32.mrb[16].mxu1 }
 0x182   : > { %1746 = vst [vmem:[%s2162_s24 + $0x58] sm:$0xff] %v1714_v44   ;;  %v1089_v49 = vadd.f32 %v2153_v33, %v1050_v46  ;;  %v1065_v50 = vmul.f32 %v2147_v29, %v1003_v48  ;;  %v1005_v51 = vpop.f32.mrb[17].mxu1 }
 0x183   : > { %v1006_v52 = vpop.f32.mrb[18].mxu1 }
 0x184   : > { %v1679_v53 = vpack.c.bf16 %v1089_v49, %v1088_v45  ;;  %v1066_v54 = vmul.f32 %v2147_v29, %v1006_v52  ;;  %v1008_v55 = vpop.f32.mrb[19].mxu1  ;;  %v1104_v57 = vadd.f32 %v2153_v33, %v1065_v50 }
 0x185   : > { %v947_v56 = vpop.f32.mrb[20].mxu0 }
 0x186   : > { %1739 = vst [vmem:[%s2162_s24 + $0x20] sm:$0xff] %v1679_v53   ;;  %v1105_v58 = vadd.f32 %v2153_v33, %v1066_v54  ;;  %v1051_v59 = vmul.f32 %v2147_v29, %v947_v56  ;;  %v949_v60 = vpop.f32.mrb[21].mxu0 }
 0x187   : > { %v950_v61 = vpop.f32.mrb[22].mxu0 }
 0x188   : > { %v1719_v62 = vpack.c.bf16 %v1105_v58, %v1104_v57  ;;  %v1090_v63 = vadd.f32 %v2153_v33, %v1051_v59  ;;  %v1052_v0 = vmul.f32 %v2147_v29, %v950_v61  ;;  %v952_v1 = vpop.f32.mrb[23].mxu0 }
 0x189   : > { %v1011_v2 = vpop.f32.mrb[20].mxu1 }
 0x18a   : > { %1747 = vst [vmem:[%s2162_s24 + $0x60] sm:$0xff] %v1719_v62   ;;  %v1091_v3 = vadd.f32 %v2153_v33, %v1052_v0  ;;  %v1067_v4 = vmul.f32 %v2147_v29, %v1011_v2  ;;  %v1013_v5 = vpop.f32.mrb[21].mxu1 }
 0x18b   : > { %v1014_v6 = vpop.f32.mrb[22].mxu1 }
 0x18c   : > { %v1684_v7 = vpack.c.bf16 %v1091_v3, %v1090_v63  ;;  %v1068_v8 = vmul.f32 %v2147_v29, %v1014_v6  ;;  %v1016_v9 = vpop.f32.mrb[23].mxu1  ;;  %v1106_v11 = vadd.f32 %v2153_v33, %v1067_v4 }
 0x18d   : > { %v955_v10 = vpop.f32.mrb[24].mxu0 }
 0x18e   : > { %1740 = vst [vmem:[%s2162_s24 + $0x28] sm:$0xff] %v1684_v7   ;;  %v1107_v12 = vadd.f32 %v2153_v33, %v1068_v8  ;;  %v1053_v13 = vmul.f32 %v2147_v29, %v955_v10  ;;  %v957_v14 = vpop.f32.mrb[25].mxu0 }
 0x18f   : > { %v958_v15 = vpop.f32.mrb[26].mxu0 }
 0x190   : > { %v1724_v16 = vpack.c.bf16 %v1107_v12, %v1106_v11  ;;  %v1092_v17 = vadd.f32 %v2153_v33, %v1053_v13  ;;  %v1054_v18 = vmul.f32 %v2147_v29, %v958_v15  ;;  %v960_v19 = vpop.f32.mrb[27].mxu0 }
 0x191   : > { %v1019_v20 = vpop.f32.mrb[24].mxu1 }
 0x192   : > { %1748 = vst [vmem:[%s2162_s24 + $0x68] sm:$0xff] %v1724_v16   ;;  %v1093_v21 = vadd.f32 %v2153_v33, %v1054_v18  ;;  %v1069_v22 = vmul.f32 %v2147_v29, %v1019_v20  ;;  %v1021_v23 = vpop.f32.mrb[25].mxu1 }
 0x193   : > { %v1022_v24 = vpop.f32.mrb[26].mxu1 }
 0x194   : > { %v1689_v25 = vpack.c.bf16 %v1093_v21, %v1092_v17  ;;  %v1070_v26 = vmul.f32 %v2147_v29, %v1022_v24  ;;  %v1024_v27 = vpop.f32.mrb[27].mxu1  ;;  %v1108_v30 = vadd.f32 %v2153_v33, %v1069_v22 }
 0x195   : > { %v963_v28 = vpop.f32.mrb[28].mxu0 }
 0x196   : > { %1741 = vst [vmem:[%s2162_s24 + $0x30] sm:$0xff] %v1689_v25   ;;  %v1109_v31 = vadd.f32 %v2153_v33, %v1070_v26  ;;  %v1055_v32 = vmul.f32 %v2147_v29, %v963_v28  ;;  %v965_v34 = vpop.f32.mrb[29].mxu0 }
 0x197   : > { %v966_v35 = vpop.f32.mrb[30].mxu0 }
 0x198   : > { %v1729_v36 = vpack.c.bf16 %v1109_v31, %v1108_v30  ;;  %v1094_v37 = vadd.f32 %v2153_v33, %v1055_v32  ;;  %v1056_v38 = vmul.f32 %v2147_v29, %v966_v35  ;;  %v968_v39 = vpop.f32.mrb[31].mxu0 }
 0x199   : > { %v1027_v40 = vpop.f32.mrb[28].mxu1 }
 0x19a   : > { %1749 = vst [vmem:[%s2162_s24 + $0x70] sm:$0xff] %v1729_v36   ;;  %v1095_v41 = vadd.f32 %v2153_v33, %v1056_v38  ;;  %v1071_v42 = vmul.f32 %v2147_v29, %v1027_v40  ;;  %v1029_v43 = vpop.f32.mrb[29].mxu1 }
 0x19b   : > { %v1030_v44 = vpop.f32.mrb[30].mxu1 }
 0x19c   : > { %v1694_v45 = vpack.c.bf16 %v1095_v41, %v1094_v37  ;;  %v1072_v46 = vmul.f32 %v2147_v29, %v1030_v44  ;;  %v1032_v47 = vpop.f32.mrb[31].mxu1  ;;  %v1110_v48 = vadd.f32 %v2153_v33, %v1071_v42 }
 0x19e   : > { %1742 = vst [vmem:[%s2162_s24 + $0x38] sm:$0xff] %v1694_v45   ;;  %v1111_v49 = vadd.f32 %v2153_v33, %v1072_v46 }
 0x1a0   : > { %v1734_v50 = vpack.c.bf16 %v1111_v49, %v1110_v48 }
 0x1a2   : > { %1750 = vst [vmem:[%s2162_s24 + $0x78] sm:$0xff] %v1734_v50  }
 0x1a3 PF: > { %s14_s19 = sadd.s32 1, %s1916_s19   ;;  %s2259_s15 = smov %s1908_s17 }
 0x1a4   : > { %p11_p7 = scmp.ge.s32.totalorder %s14_s19, 6   ;;  %s2260_s16 = smov %s1912_s18 }
 0x1a5   : > { %s2261_s17 = smov %s2264_s20  ;;  %s2262_s18 = smov %s2268_s21 }
 0x1a6   :  { %13 = sbr.rel (!%p11_p7) target bundleno = 3 (0x3), region = 78 }

</bundles_post_ra>
